<compile_context>
chip_gen: v5e
topology: v5e:2x2
jax: 0.10.0
libtpu: 0.0.40
codegen_flags: <defaults>
</compile_context>

<pallas_src>
import jax
import jax.numpy as jnp
from jax.experimental import pallas as pl
from jax.experimental.pallas import tpu as pltpu


def _lin_loc_symp_up_kernel(f_ref, tau_ref, delta_ref):
    """One grid step: batch block `bi`, tau row tile `it` (both parallel).

    Blocks:
      f_ref     (Bb, 1, S)    precomputed f = X @ v (f32), lane-dense
      tau_ref   (Bb, tR, S)   contiguous row tile of tau
      delta_ref (Bb, 1, tR)   delta[b, i] = sum_j tau[b, i, j] * f[b, j]
    """
    tau = tau_ref[...].astype(jnp.float32)          # (Bb, tR, S)
    f = f_ref[...].astype(jnp.float32)              # (Bb, 1, S), broadcasts over rows
    part = jnp.sum(tau * f, axis=-1)                # (Bb, tR)  VPU mul + lane reduce
    delta_ref[...] = part[:, None, :]               # (Bb, 1, tR) written directly


def _vmem_budgets():
    """Return (vmem_limit_bytes, tau_budget_bytes) tuned per TPU generation."""
    vmem_cap = 64 * 1024 * 1024                     # conservative default (v7x per-TC)
    try:
        info = pltpu.get_tpu_info()
        vmem_cap = int(getattr(info, "vmem_capacity_bytes", vmem_cap))
    except Exception:
        pass
    if vmem_cap <= 64 * 1024 * 1024:
        # v7x: 64 MiB per TensorCore -- leave headroom for compiler scratch.
        return 48 * 1024 * 1024, 20 * 1024 * 1024
    # v5e / v6e: 128 MiB physical VMEM -- big tiles, few grid steps.
    return 100 * 1024 * 1024, 40 * 1024 * 1024


def _choose_tiles(B, S, tau_itemsize, budget_bytes):
    """Pick (Bb, tR): batch block and tau ROW tile.

    Mosaic tiling constraints: tR must be a multiple of 128 dividing S, or
    equal S; Bb must divide B.  The VMEM accounting covers the double-buffered
    tau block plus the sublane-padded f and output blocks.
    """
    # Cap Bb at B // 2 when B >= 2 so v7x's second TensorCore always has a
    # parallel grid iteration to work on; Bb must remain a divisor of B.
    bb = B if B < 2 else B // 2
    while B % bb:
        bb -= 1

    def vmem_used(bb_, tr_):
        tau_b = 2 * bb_ * tr_ * S * tau_itemsize    # double-buffered tau row tile
        f_b = 2 * bb_ * 8 * S * 4                   # (Bb,1,S) pads sublane dim to 8
        out_b = 2 * bb_ * 8 * tr_ * 4               # (Bb,1,tR) output block (padded)
        return tau_b + f_b + out_b

    tr = S
    # Shrink the row tile first (only through 128-multiple divisors of S).
    while vmem_used(bb, tr) > budget_bytes and tr % 256 == 0:
        tr //= 2
    # Then shrink the batch block.
    while vmem_used(bb, tr) > budget_bytes and bb > 1:
        bb -= 1
        while B % bb:
            bb -= 1
    # Guarantee >= 2 parallel grid iterations for v7x whenever possible.
    if B // bb == 1 and S // tr == 1 and tr % 256 == 0:
        tr //= 2
    return bb, tr


def lin_loc_symp_up_forward(X, tau, W, w, k1, *, tau_budget_bytes=None,
                            vmem_limit_bytes=None):
    """Pallas implementation of LinLocSympModule_Up.forward -> (X_out, tau)."""
    B, S, d = X.shape
    m, dm1 = W.shape
    if dm1 != d - 1:
        raise ValueError(f"W must have shape (m, d-1) = ({m}, {d - 1}), got {W.shape}")
    if not (1 <= k1 <= d - 1):
        # k1 == d would slice a non-existent column of W (W has d-1 columns);
        # the PyTorch module fails there too, so reject it explicitly.
        raise ValueError(f"k1 must satisfy 1 <= k1 <= d-1 (got k1={k1}, d={d})")
    if tau.shape != (B, S, S):
        raise ValueError(f"tau must have shape (B, S, S) = {(B, S, S)}, got {tau.shape}")
    k = k1 - 1

    # Fold the linear parameter chain into a single (d, 1) vector with a zero
    # at row k:   y @ W.T @ (w * W[:, k:k+1])  ==  X @ v
    wk = (w * W[:, k:k + 1]).astype(jnp.float32)                          # (m, 1)
    v_red = W.astype(jnp.float32).T @ wk                                  # (d-1, 1)
    v = jnp.concatenate(
        [v_red[:k], jnp.zeros((1, 1), jnp.float32), v_red[k:]], axis=0)   # (d, 1)

    # Tiny XLA matvec in the wrapper -> lane-dense f of shape (B, 1, S).
    f = jnp.transpose(jnp.matmul(X.astype(jnp.float32), v), (0, 2, 1))    # (B, 1, S)

    default_vmem_limit, default_tau_budget = _vmem_budgets()
    if vmem_limit_bytes is None:
        vmem_limit_bytes = default_vmem_limit
    if tau_budget_bytes is None:
        tau_budget_bytes = default_tau_budget

    Bb, tR = _choose_tiles(B, S, jnp.dtype(tau.dtype).itemsize, tau_budget_bytes)
    grid = (B // Bb, S // tR)

    delta = pl.pallas_call(
        _lin_loc_symp_up_kernel,
        out_shape=jax.ShapeDtypeStruct((B, 1, S), jnp.float32),
        grid=grid,
        in_specs=[
            pl.BlockSpec((Bb, 1, S), lambda bi, it: (bi, 0, 0)),    # f (replicated across row tiles)
            pl.BlockSpec((Bb, tR, S), lambda bi, it: (bi, it, 0)),  # contiguous tau row tile
        ],
        out_specs=pl.BlockSpec((Bb, 1, tR), lambda bi, it: (bi, 0, it)),  # lane-dense delta
        compiler_params=pltpu.CompilerParams(
            dimension_semantics=("parallel", "parallel"),
            vmem_limit_bytes=vmem_limit_bytes,
        ),
    )(f, tau)

    # Single-column update applied functionally in the wrapper.
    X_out = X.at[:, :, k].add(delta[:, 0, :].astype(X.dtype))
    return X_out, tau


def _reference(X, tau, W, w, k1):
    """Pure-JAX reference matching the PyTorch forward op-for-op."""
    d = X.shape[-1]
    k = k1 - 1
    idx = [i for i in range(d) if i != k]
    y = X[:, :, idx]                                   # (B, S, d-1)
    f = jnp.matmul(y, W.T)                             # (B, S, m)
    f = jnp.matmul(f, w * W[:, k:k + 1])               # (B, S, 1)
    X_out = X.at[:, :, k:k + 1].add(jnp.matmul(tau, f))
    return X_out, tau


if __name__ == "__main__":
    # Module hyperparameters (shapes from __init__); k2, L unused in forward.
    d, k1, k2, m, L = 4, 2, 3, 32, 1
    sqrt_var = 0.1

    key = jax.random.PRNGKey(0)
    kW, kw, kX, ktau, kX2, ktau2 = jax.random.split(key, 6)

    W = sqrt_var * jax.random.normal(kW, (m, d - 1), dtype=jnp.float32)
    w = sqrt_var * jax.random.normal(kw, (m, 1), dtype=jnp.float32)

    # --- Small demo shapes (grid = (2, 1): batch-parallel only) -----------
    B, S = 2, 8
    X = jax.random.normal(kX, (B, S, d), dtype=jnp.float32)
    tau = 0.1 * jax.random.normal(ktau, (B, S, S), dtype=jnp.float32)

    X_out, tau_out = lin_loc_symp_up_forward(X, tau, W, w, k1)
    X_out = jax.block_until_ready(X_out)

    X_ref, _ = _reference(X, tau, W, w, k1)
    assert jnp.allclose(X_out, X_ref, atol=1e-5, rtol=1e-5), "mismatch vs reference (small)"
    assert jnp.allclose(tau_out, tau), "tau must pass through unchanged"

    # --- Larger shape exercising batch blocking + tau row tiling ----------
    # Tiny budget forces Bb=1, tR=128 -> grid=(2, 2), both axes parallel.
    B2, S2 = 2, 256
    X2 = jax.random.normal(kX2, (B2, S2, d), dtype=jnp.float32)
    tau2 = 0.1 * jax.random.normal(ktau2, (B2, S2, S2), dtype=jnp.float32)

    X2_out, _ = lin_loc_symp_up_forward(X2, tau2, W, w, k1,
                                        tau_budget_bytes=300 * 1024)
    X2_out = jax.block_until_ready(X2_out)

    X2_ref, _ = _reference(X2, tau2, W, w, k1)
    assert jnp.allclose(X2_out, X2_ref, atol=1e-5, rtol=1e-5), "mismatch vs reference (tiled)"

    print("KERNEL_OK")
</pallas_src>

<mosaic_0001>
module attributes {stable_mosaic.version = 11 : i64} {
  func.func @_lin_loc_symp_up_kernel(%arg0: i32, %arg1: i32, %arg2: memref<1x1x8xf32, #tpu.memory_space<vmem>>, %arg3: memref<1x8x8xf32, #tpu.memory_space<vmem>>, %arg4: memref<1x1x8xf32, #tpu.memory_space<vmem>>) attributes {dimension_semantics = [#tpu.dimension_semantics<parallel>, #tpu.dimension_semantics<parallel>], iteration_bounds = array<i64: 2, 1>, scalar_prefetch = 0 : i64, scratch_operands = 0 : i64, tpu.core_type = #tpu.core_type<tc>, window_params = [{transform_indices = @transform_0, window_bounds = array<i64: 1, 1, 8>}, {transform_indices = @transform_1, window_bounds = array<i64: 1, 8, 8>}, {transform_indices = @transform_2, window_bounds = array<i64: 1, 1, 8>}]} {
    %c0 = arith.constant 0 : index
    %c0_0 = arith.constant 0 : index
    %c0_1 = arith.constant 0 : index
    %0 = vector.load %arg3[%c0, %c0_0, %c0_1] : memref<1x8x8xf32, #tpu.memory_space<vmem>>, vector<1x8x8xf32>
    %c0_2 = arith.constant 0 : index
    %c0_3 = arith.constant 0 : index
    %c0_4 = arith.constant 0 : index
    %1 = vector.load %arg2[%c0_2, %c0_3, %c0_4] : memref<1x1x8xf32, #tpu.memory_space<vmem>>, vector<1x1x8xf32>
    %2 = vector.broadcast %1 : vector<1x1x8xf32> to vector<1x8x8xf32>
    %3 = arith.mulf %0, %2 : vector<1x8x8xf32>
    %cst = arith.constant dense<0.000000e+00> : vector<1x8xf32>
    %4 = vector.multi_reduction <add>, %3, %cst [2] : vector<1x8x8xf32> to vector<1x8xf32>
    %5 = vector.shape_cast %4 : vector<1x8xf32> to vector<1x1x8xf32>
    %c0_5 = arith.constant 0 : index
    %c0_6 = arith.constant 0 : index
    %c0_7 = arith.constant 0 : index
    %6 = vector.load %arg4[%c0_5, %c0_6, %c0_7] : memref<1x1x8xf32, #tpu.memory_space<vmem>>, vector<1x1x8xf32>
    tpu.vector_store %arg4[%c0_5, %c0_6, %c0_7], %5 {strides = array<i32>} : memref<1x1x8xf32, #tpu.memory_space<vmem>>, vector<1x1x8xf32>,
    return
  }
  func.func @transform_0(%arg0: i32, %arg1: i32) -> (i32, i32, i32) {
    %c0_i32 = arith.constant 0 : i32
    %c0_i32_0 = arith.constant 0 : i32
    %c0_i32_1 = arith.constant 0 : i32
    return %arg0, %c0_i32, %c0_i32_0 : i32, i32, i32
  }
  func.func @transform_1(%arg0: i32, %arg1: i32) -> (i32, i32, i32) {
    %c0_i32 = arith.constant 0 : i32
    %c0_i32_0 = arith.constant 0 : i32
    return %arg0, %arg1, %c0_i32 : i32, i32, i32
  }
  func.func @transform_2(%arg0: i32, %arg1: i32) -> (i32, i32, i32) {
    %c0_i32 = arith.constant 0 : i32
    %c0_i32_0 = arith.constant 0 : i32
    return %arg0, %c0_i32, %arg1 : i32, i32, i32
  }
}

</mosaic_0001>

<bundles_post_ra>
// kernel: tpu_custom_call.1
= control target key start
LH: loop header
LB: loop body
LE: loop exit
PB: predicated region body
PF: predicated region fallthrough
CT: control target
= control target key end

     0   :  { %7 = vsyncpa [#allocation3], 0  ;;  %s718_s0 = inlined_call_operand.hbm [shape: f32[2,1,8], index: 0, kind: input, shape index: {}]   ;;  %s719_s1 = inlined_call_operand.hbm [shape: f32[2,8,8], index: 1, kind: input, shape index: {}]   ;;  %s720_s2 = inlined_call_operand.hbm [shape: f32[2,1,8], index: 2, kind: output, shape index: {}]  }
   0x1   :  { %9 = vsyncpa [#allocation3 + $0x1], 0 }
   0x2   :  { %10 = vsyncpa [#allocation6], 0 }
   0x3   :  { %12 = vsyncpa [#allocation6 + $0x1], 0 }
   0x4   :  { %13 = vsyncpa [#allocation4], 0 }
   0x5   :  { %15 = vsyncpa [#allocation4 + $0x1], 0  ;;  %s579_s9 = smov 0   ;;  %s581_s10 = smov 0  }
   0x6   :  { %s583_s11 = smov 0   ;;  %s585_s12 = smov 0  }
   0x7   :  { %s587_s13 = smov 0   ;;  %s589_s14 = smov 0  }
   0x8 LB: > { %s338_s15 = sadd.s32 4294967295, %s562_s14   ;;  %s339_s16 = sadd.s32 4294967294, %s562_s14   ;;  %s562_s14 = sphi %s589_s14, %s21_s14   ;;  %s558_s13 = sphi %s587_s13, %s730_s13   ;;  %s554_s12 = sphi %s585_s12, %s729_s12   ;;  %s550_s11 = sphi %s583_s11, %s728_s11   ;;  %s546_s10 = sphi %s581_s10, %s727_s10   ;;  %s542_s9 = sphi %s579_s9, %s726_s9  }
   0x9   : > { %s33_s17 = sadd.s32 1, %s558_s13  ;;  %s40_s18 = sadd.s32 1, %s550_s11 }
   0xa   : > { %p35_p0 = scmp.ge.s32.totalorder %s33_s17, 2  ;;  %p47_p1 = scmp.ne.s32.totalorder %s550_s11, %s546_s10 }
   0xb   : > { %p48_p2 = scmp.eq.s32.totalorder %s562_s14, 0  ;;  %p53_p3 = scmp.ne.s32.totalorder %s546_s10, %s542_s9 }
   0xc   : > { %s732_s17 = smov (%p35_p0, %s33_s17), 0  ;;  %p54_p5 = scmp.eq.s32.totalorder %s338_s15, 0 }
   0xd   : > { %p620_p4 = por %p48_p2, %p47_p1  ;;  %s37_s20 = ssub.s32 %s558_s13, %s732_s17 }
   0xe   : > { %p107_p6 = scmp.eq.s32.totalorder %s338_s15, 1  ;;  %p38_p7 = scmp.eq.s32.totalorder %s37_s20, 0 }
   0xf   : > { %p626_p8 = por %p54_p5, %p53_p3  ;;  %p113_p10 = scmp.eq.s32.totalorder %s339_s16, 1 }
  0x10   : > { %p630_p9 = por %p107_p6, %p47_p1  ;;  %p341_p12 = scmp.ge.s32.totalorder %s562_s14, 2 }
  0x11   : > { %s635_s23 = scalar_select %p38_p7, %s550_s11, %s40_s18  }
  0x12   : > { %p637_p11 = por %p113_p10, %p53_p3  ;;  %p365_p13 = scmp.lt.s32.totalorder %s562_s14, 2 }
  0x13   : > { %s133_s25 = sand.u32 1, %s550_s11   ;;  %s139_s28 = scalar_lea.hbm %s718_s0, %s558_s13 }
  0x14   : > { %s136_s29 = scalar_lea.vmem [#allocation2], %s133_s25  ;;  %s141_s3 = sshll.u32 %s139_s28, 4  ;;  %s142_s3 = int_to_ptr.hbm [resolvable:$true] %s141_s3 }
  0x15   : > { %s143_s30 = sshll.u32 %s136_s29, 4  ;;  %p650_p0 = pnand %p365_p13, %p620_p4  ;;  %s144_s30 = int_to_ptr.vmem [resolvable:$true] %s143_s30 }
  0x16   : > { %p344_p1 = scmp.ge.s32.totalorder %s562_s14, 1  ;;  %p168_p2 = scmp.lt.s32.totalorder %s562_s14, 3 }
  0x17   : > { %s134_s5 = scalar_lea.sflag [#allocation3], %s133_s25  ;;  %s342_s6 = sshll.u32 %s133_s25, 3 }
  0x18   : > { %357 = dma.hbm_to_vmem [thread:$0]  (!%p650_p0), %s142_s3, 16, %s144_s30, %s134_s5  }
  0x19   : > { %p169_p3 = pnand %p344_p1, %p168_p2  ;;  %s343_s7 = sshll.u32 %s558_s13, 3 }
  0x1a   : > { %s159_s16 = scalar_lea.hbm %s719_s1, %s343_s7  ;;  %s154_s18 = scalar_lea.vmem [#allocation5], %s342_s6 }
  0x1b   : > { %s163_s19 = sshll.u32 %s154_s18, 4  ;;  %s161_s20 = sshll.u32 %s159_s16, 4  ;;  %s164_s19 = int_to_ptr.vmem [resolvable:$true] %s163_s19  ;;  %s162_s20 = int_to_ptr.hbm [resolvable:$true] %s161_s20 }
  0x1c   : > { %s151_s26 = scalar_lea.sflag [#allocation6], %s133_s25  ;;  %172 = sbr.rel (%p169_p3) target bundleno = 162 (0xa2), region = 28 }
  0x1d   : > { %360 = dma.hbm_to_vmem [thread:$0]  (!%p650_p0), %s162_s20, 128, %s164_s19, %s151_s26  }
  0x1e   : > { %s665_s27 = sand.u32 (!%p169_p3), 1, %s546_s10  }
  0x1f   : > { %s175_s28 = scalar_lea.sflag (!%p169_p3), [#allocation3], %s665_s27  ;;  %s177_s29 = scalar_lea.vmem (!%p169_p3), [#allocation2], %s665_s27 }
  0x21   : > { %529 = dma.done.wait (%p626_p8), %s175_s28, 16  }
  0x22   : > { %531 = vsyncadd (%p626_p8), %s175_s28, 4294967280  ;;  %s345_s25 = sshll.u32 %s665_s27, 3  ;;  %s184_s30 = scalar_lea.sflag [#allocation6], %s665_s27 }
  0x23   : > { %s187_s3 = scalar_lea.vmem [#allocation5], %s345_s25 }
  0x24   : > { %533 = dma.done.wait (%p626_p8), %s184_s30, 128  }
  0x25   : > { %535 = vsyncadd (%p626_p8), %s184_s30, 4294967168  ;;  %v212_v0 = vld [vmem:[%s187_s3] sm:$0xff]  ;;  %v415_v1 = vld [vmem:[%s177_s29] ss:$0 sm:$0xff]  ;;  %vm218_vm0 = vcmask 64512   ;;  %v223_v4 = vlaneseq  ;;  %s239_s6 = scalar_lea.hbm %s720_s2, %s554_s12  ;;  %s211_s7 = scalar_lea.vmem [#allocation7], %s665_s27 }
  0x26   : > { %v217_v2 = vmul.f32 %v415_v1, %v212_v0  ;;  %s241_s8 = sshll.u32 %s211_s7, 4  ;;  %s243_s21 = sshll.u32 %s239_s6, 4  ;;  %vm227_vm1 = vcmask 57344   ;;  %s242_s8 = int_to_ptr.vmem [resolvable:$true] %s241_s8  ;;  %s244_s21 = int_to_ptr.hbm [resolvable:$true] %s243_s21 }
  0x27   : > { %v224_v5 = vand.u32 127, %v223_v4  ;;  %s230_s15 = scalar_lea.sflag [#allocation4], %s665_s27  ;;  %s490_s16 = sshra.s32 %s244_s21, 4  ;;  %s491_s16 = int_to_ptr.hbm [resolvable:$true] %s490_s16 }
  0x28   : > { %v219_v3 = vsel %vm218_vm0, %v217_v2, 0.0  ;;  %s492_s18 = scalar_lea.hbm %s491_s16, 1  ;;  %s496_s20 = scalar_lea.hbm %s720_s2, 2 }
  0x29   : > { %220 = vadd.xlane.f32.xlu0 %v219_v3  ;;  %p493_p4 = scmp.ne.s32.totalorder %s491_s16, %s492_s18  ;;  %p497_p7 = scmp.lt.s32.totalorder %s491_s16, %s720_s2 }
  0x2a   : > { %p498_p8 = scmp.lt.s32.totalorder %s496_s20, %s492_s18 }
  0x2b   : > { %p494_p5 = pnand %p493_p4, %p630_p9 }
  0x2c   : > { %p499_p10 = por %p498_p8, %p497_p7 }
  0x2d   : > { %p495_p6 = pneg %p494_p5 }
  0x2f   : > { %p500_p13 = pnand %p499_p10, %p495_p6 }
  0x9c   : > { %v221_v6 = vpop.xlane.xlu0 %220 }
  0x9d   : > { %v225_v7 = vperm.slane %v221_v6, %v224_v5 }
  0x9f   : > { %228 = vst.msk [vmem:[%s211_s7] sm:$0x1] %vm227_vm1, %v225_v7 }
  0xa0   : > { %503 = shalt.err (!%p500_p13)
}
  0xa1   : > { %352 = dma.vmem_to_hbm [thread:$0]  (%p630_p9), %s242_s8, 16, %s244_s21, %s230_s15  }
  0xa2 PF: > { %s255_s27 = sand.u32 1, %s542_s9   ;;  %p362_p0 = pnand %p341_p12, %p637_p11 }
  0xa3   : > { %s256_s29 = scalar_lea.sflag [#allocation4], %s255_s27 }
  0xa4   : > { %p363_p1 = pneg %p362_p0 }
  0xa6   : > { %537 = dma.done.wait (%p363_p1), %s256_s29, 16  }
  0xa7   : > { %539 = vsyncadd (%p363_p1), %s256_s29, 4294967280  ;;  %s21_s14 = sadd.s32 1, %s562_s14   ;;  %s726_s9 = smov %s546_s10 }
  0xa8   : > { %p18_p2 = scmp.ge.s32.totalorder %s21_s14, 4   ;;  %s727_s10 = smov %s550_s11 }
  0xa9   : > { %s728_s11 = smov %s635_s23  ;;  %s729_s12 = smov %s558_s13 }
  0xaa   : > { %s730_s13 = smov %s732_s17  ;;  %20 = sbr.rel (!%p18_p2) target bundleno = 8 (0x8), region = 86 }
  0xaf   :  { %261 = vsyncpa [#allocation3], 1 }
  0xb0   :  { %263 = vsyncpa [#allocation3 + $0x1], 1 }
  0xb1   :  { %264 = vsyncpa [#allocation6], 1 }
  0xb2   :  { %266 = vsyncpa [#allocation6 + $0x1], 1 }
  0xb3   :  { %267 = vsyncpa [#allocation4], 1 }
  0xb4   :  { %269 = vsyncpa [#allocation4 + $0x1], 1 }

</bundles_post_ra>
